<compile_context>
chip_gen: v7x
topology: tpu7x:2x2x1
jax: 0.10.0
libtpu: 0.0.40
codegen_flags: <defaults>
</compile_context>

<pallas_src>
import functools

import jax
import jax.numpy as jnp
import numpy as np
from jax import lax
from jax.experimental import pallas as pl
from jax.experimental.pallas import tpu as pltpu


# ---------------------------------------------------------------------------
# Fused kernel: one batch element per grid step.
# ---------------------------------------------------------------------------
def _fused_attention_kernel(x_ref, wqkv_ref, wprojh_ref, bproj_ref, o_ref, *,
                            num_heads, scale):
    """x_ref      : (N, C)     bf16 input tokens for this batch element
       wqkv_ref   : (3C, C)    bf16 qkv weight, PyTorch layout (out, in)
       wprojh_ref : (H, D, C)  bf16 proj weight, head-major view of (C, C)
       bproj_ref  : (1, C)     f32  proj bias
       o_ref      : (N, C)     output tokens
    """
    N, C = x_ref.shape
    H = num_heads
    D = C // H

    x = x_ref[...]                                              # (N, C) bf16

    # qkv = x @ Wqkv^T : bf16 operands, f32 accumulation on the MXU.
    qkv = lax.dot_general(x, wqkv_ref[...], (((1,), (1,)), ((), ())),
                          preferred_element_type=jnp.float32)   # (N, 3C) f32

    # Column layout matches reshape(B, N, 3, H, D): [q heads | k heads | v heads].
    def to_heads(mat):                                          # (N, C) -> (H, N, D)
        return jnp.stack([mat[:, h * D:(h + 1) * D] for h in range(H)], axis=0)

    q = to_heads(qkv[:, 0:C] * scale).astype(jnp.bfloat16)      # scale folded into q
    k = to_heads(qkv[:, C:2 * C]).astype(jnp.bfloat16)
    v = to_heads(qkv[:, 2 * C:3 * C]).astype(jnp.bfloat16)

    # Scores: batched over heads, contracting head_dim (bf16 -> f32 accumulate).
    s = jnp.einsum("hqd,hkd->hqk", q, k,
                   preferred_element_type=jnp.float32)          # (H, N, N) f32

    # Softmax in f32; normalization deferred until after the PV matmul.
    m = jnp.max(s, axis=-1, keepdims=True)
    p = jnp.exp(s - m)
    l = jnp.sum(p, axis=-1, keepdims=True)                      # (H, N, 1) f32

    o = jnp.einsum("hqk,hkd->hqd", p.astype(jnp.bfloat16), v,
                   preferred_element_type=jnp.float32)          # (H, N, D) f32
    o = o * pl.reciprocal(l, approx=False)                      # exact recip (EUP)

    # Output projection: head-batched matmul against the (H, D, C) weight,
    # then a cheap sum over heads.  Same MAC count as (N, C) @ (C, C) but it
    # never re-assembles an (N, C) activation via sub-lane-width masked stores.
    per_head = jnp.einsum("hnd,hdc->hnc", o.astype(jnp.bfloat16),
                          wprojh_ref[...],
                          preferred_element_type=jnp.float32)   # (H, N, C) f32
    out = jnp.sum(per_head, axis=0) + bproj_ref[...]            # (N, C) f32

    o_ref[...] = out.astype(o_ref.dtype)                        # lane-dense store


# ---------------------------------------------------------------------------
# Wrapper: weights arrive in PyTorch Linear layout (out_features, in_features).
# ---------------------------------------------------------------------------
def attention_forward(x, w_qkv, w_proj, b_proj, *, num_heads):
    B, N, C = x.shape
    H = num_heads
    D = C // H
    scale = D ** (-0.5)
    out_dtype = x.dtype

    # bf16 operands for the MXU (accumulation stays f32 inside the kernel).
    x_bf = x.astype(jnp.bfloat16)
    w_qkv_bf = w_qkv.astype(jnp.bfloat16)                       # (3C, C)
    # (C_out, C_in=H*D) -> head-major (H, D, C_out): W[c_out, h*D+d] -> Wh[h, d, c_out]
    w_projh_bf = w_proj.reshape(C, H, D).transpose(1, 2, 0).astype(jnp.bfloat16)
    b_proj2d = b_proj.reshape(1, C).astype(jnp.float32)

    flops = B * (2 * N * C * (3 * C)        # qkv projection
                 + 4 * H * N * N * D        # QK^T + PV
                 + 2 * N * C * C)           # output projection
    transcendentals = B * H * N * N         # softmax exp
    bytes_accessed = (x_bf.size * 2 + w_qkv_bf.size * 2 + w_projh_bf.size * 2
                      + b_proj2d.size * 4 + B * N * C * out_dtype.itemsize)

    kernel = functools.partial(_fused_attention_kernel,
                               num_heads=H, scale=scale)
    return pl.pallas_call(
        kernel,
        out_shape=jax.ShapeDtypeStruct((B, N, C), out_dtype),
        grid=(B,),
        in_specs=[
            pl.BlockSpec((None, N, C), lambda b: (b, 0, 0)),    # x: one batch slab
            pl.BlockSpec((3 * C, C), lambda b: (0, 0)),         # Wqkv (resident)
            pl.BlockSpec((H, D, C), lambda b: (0, 0, 0)),       # Wproj head-major
            pl.BlockSpec((1, C), lambda b: (0, 0)),             # bias
        ],
        out_specs=pl.BlockSpec((None, N, C), lambda b: (b, 0, 0)),
        compiler_params=pltpu.CompilerParams(
            dimension_semantics=("parallel",),
            vmem_limit_bytes=32 * 1024 * 1024),
        cost_estimate=pl.CostEstimate(flops=flops,
                                      transcendentals=transcendentals,
                                      bytes_accessed=bytes_accessed),
    )(x_bf, w_qkv_bf, w_projh_bf, b_proj2d)


# ---------------------------------------------------------------------------
# Pure-JAX reference (mirrors the PyTorch module line by line, f32).
# ---------------------------------------------------------------------------
def attention_ref(x, w_qkv, w_proj, b_proj, *, num_heads):
    B, N, C = x.shape
    D = C // num_heads
    scale = D ** (-0.5)
    qkv = (x @ w_qkv.T).reshape(B, N, 3, num_heads, D).transpose(2, 0, 3, 1, 4)
    q, k, v = qkv[0], qkv[1], qkv[2]
    attn = jnp.einsum("bhnd,bhmd->bhnm", q, k) * scale
    attn = jax.nn.softmax(attn, axis=-1)
    o = jnp.einsum("bhnm,bhmd->bhnd", attn, v).transpose(0, 2, 1, 3).reshape(B, N, C)
    return o @ w_proj.T + b_proj


if __name__ == "__main__":
    # Small shapes consistent with the module: dim=C=32, num_heads=4 -> head_dim=8
    B, N, C, H = 2, 8, 32, 4

    key = jax.random.PRNGKey(0)
    kx, kw1, kw2, kb2 = jax.random.split(key, 4)
    x = jax.random.normal(kx, (B, N, C), jnp.float32)
    # PyTorch Linear weight layout: (out_features, in_features)
    w_qkv = jax.random.normal(kw1, (3 * C, C), jnp.float32) * 0.05   # qkv_bias=False
    w_proj = jax.random.normal(kw2, (C, C), jnp.float32) * 0.05
    b_proj = jax.random.normal(kb2, (C,), jnp.float32) * 0.05

    out = attention_forward(x, w_qkv, w_proj, b_proj, num_heads=H)
    jax.block_until_ready(out)

    ref = attention_ref(x, w_qkv, w_proj, b_proj, num_heads=H)
    # tolerance accounts for bf16 matmul operands (f32 accumulation)
    np.testing.assert_allclose(np.asarray(out), np.asarray(ref),
                               rtol=5e-2, atol=2e-2)

    print("KERNEL_OK")
</pallas_src>

<mosaic_0001>
module attributes {stable_mosaic.version = 11 : i64} {
  func.func @_fused_attention_kernel(%arg0: i32, %arg1: memref<1x8x32xbf16, #tpu.memory_space<vmem>>, %arg2: memref<96x32xbf16, #tpu.memory_space<vmem>>, %arg3: memref<4x8x32xbf16, #tpu.memory_space<vmem>>, %arg4: memref<1x32xf32, #tpu.memory_space<vmem>>, %arg5: memref<1x8x32xf32, #tpu.memory_space<vmem>>) attributes {dimension_semantics = [#tpu.dimension_semantics<parallel>], iteration_bounds = array<i64: 2>, scalar_prefetch = 0 : i64, scratch_operands = 0 : i64, tpu.core_type = #tpu.core_type<tc>, window_params = [{transform_indices = @transform_0, window_bounds = array<i64: 1, 8, 32>}, {pipeline_mode = #tpu.pipeline_mode<synchronous>, transform_indices = @transform_1, window_bounds = array<i64: 96, 32>}, {pipeline_mode = #tpu.pipeline_mode<synchronous>, transform_indices = @transform_2, window_bounds = array<i64: 4, 8, 32>}, {pipeline_mode = #tpu.pipeline_mode<synchronous>, transform_indices = @transform_3, window_bounds = array<i64: 1, 32>}, {transform_indices = @transform_4, window_bounds = array<i64: 1, 8, 32>}]} {
    %c0 = arith.constant 0 : index
    %c0_0 = arith.constant 0 : index
    %c0_1 = arith.constant 0 : index
    %0 = vector.load %arg1[%c0, %c0_0, %c0_1] : memref<1x8x32xbf16, #tpu.memory_space<vmem>>, vector<1x8x32xbf16>
    %1 = vector.shape_cast %0 : vector<1x8x32xbf16> to vector<8x32xbf16>
    %c0_2 = arith.constant 0 : index
    %c0_3 = arith.constant 0 : index
    %2 = vector.load %arg2[%c0_2, %c0_3] : memref<96x32xbf16, #tpu.memory_space<vmem>>, vector<96x32xbf16>
    %cst = arith.constant dense<0.000000e+00> : vector<8x96xf32>
    %3 = tpu.matmul %1, %2, %cst {dimension_numbers = #tpu.dot_dimension_numbers<[1], [1], [0], [0], [0, 0, 1, 0], [], []>} : vector<8x32xbf16>, vector<96x32xbf16>, vector<8x96xf32> -> vector<8x96xf32>
    %4 = vector.extract_strided_slice %3 {offsets = [0, 0], sizes = [8, 32], strides = [1, 1]} : vector<8x96xf32> to vector<8x32xf32>
    %cst_4 = arith.constant 0.353553385 : f32
    %5 = vector.broadcast %cst_4 : f32 to vector<8x32xf32>
    %6 = arith.mulf %4, %5 : vector<8x32xf32>
    %7 = vector.extract_strided_slice %6 {offsets = [0, 0], sizes = [8, 8], strides = [1, 1]} : vector<8x32xf32> to vector<8x8xf32>
    %8 = vector.extract_strided_slice %6 {offsets = [0, 8], sizes = [8, 8], strides = [1, 1]} : vector<8x32xf32> to vector<8x8xf32>
    %9 = vector.extract_strided_slice %6 {offsets = [0, 16], sizes = [8, 8], strides = [1, 1]} : vector<8x32xf32> to vector<8x8xf32>
    %10 = vector.extract_strided_slice %6 {offsets = [0, 24], sizes = [8, 8], strides = [1, 1]} : vector<8x32xf32> to vector<8x8xf32>
    %11 = vector.shape_cast %7 : vector<8x8xf32> to vector<1x8x8xf32>
    %12 = vector.shape_cast %8 : vector<8x8xf32> to vector<1x8x8xf32>
    %13 = vector.shape_cast %9 : vector<8x8xf32> to vector<1x8x8xf32>
    %14 = vector.shape_cast %10 : vector<8x8xf32> to vector<1x8x8xf32>
    %15 = tpu.concatenate %11, %12, %13, %14 in 0 : vector<1x8x8xf32>, vector<1x8x8xf32>, vector<1x8x8xf32>, vector<1x8x8xf32> -> vector<4x8x8xf32>
    %16 = arith.truncf %15 : vector<4x8x8xf32> to vector<4x8x8xbf16>
    %17 = vector.extract_strided_slice %3 {offsets = [0, 32], sizes = [8, 32], strides = [1, 1]} : vector<8x96xf32> to vector<8x32xf32>
    %18 = vector.extract_strided_slice %17 {offsets = [0, 0], sizes = [8, 8], strides = [1, 1]} : vector<8x32xf32> to vector<8x8xf32>
    %19 = vector.extract_strided_slice %17 {offsets = [0, 8], sizes = [8, 8], strides = [1, 1]} : vector<8x32xf32> to vector<8x8xf32>
    %20 = vector.extract_strided_slice %17 {offsets = [0, 16], sizes = [8, 8], strides = [1, 1]} : vector<8x32xf32> to vector<8x8xf32>
    %21 = vector.extract_strided_slice %17 {offsets = [0, 24], sizes = [8, 8], strides = [1, 1]} : vector<8x32xf32> to vector<8x8xf32>
    %22 = vector.shape_cast %18 : vector<8x8xf32> to vector<1x8x8xf32>
    %23 = vector.shape_cast %19 : vector<8x8xf32> to vector<1x8x8xf32>
    %24 = vector.shape_cast %20 : vector<8x8xf32> to vector<1x8x8xf32>
    %25 = vector.shape_cast %21 : vector<8x8xf32> to vector<1x8x8xf32>
    %26 = tpu.concatenate %22, %23, %24, %25 in 0 : vector<1x8x8xf32>, vector<1x8x8xf32>, vector<1x8x8xf32>, vector<1x8x8xf32> -> vector<4x8x8xf32>
    %27 = arith.truncf %26 : vector<4x8x8xf32> to vector<4x8x8xbf16>
    %28 = vector.extract_strided_slice %3 {offsets = [0, 64], sizes = [8, 32], strides = [1, 1]} : vector<8x96xf32> to vector<8x32xf32>
    %29 = vector.extract_strided_slice %28 {offsets = [0, 0], sizes = [8, 8], strides = [1, 1]} : vector<8x32xf32> to vector<8x8xf32>
    %30 = vector.extract_strided_slice %28 {offsets = [0, 8], sizes = [8, 8], strides = [1, 1]} : vector<8x32xf32> to vector<8x8xf32>
    %31 = vector.extract_strided_slice %28 {offsets = [0, 16], sizes = [8, 8], strides = [1, 1]} : vector<8x32xf32> to vector<8x8xf32>
    %32 = vector.extract_strided_slice %28 {offsets = [0, 24], sizes = [8, 8], strides = [1, 1]} : vector<8x32xf32> to vector<8x8xf32>
    %33 = vector.shape_cast %29 : vector<8x8xf32> to vector<1x8x8xf32>
    %34 = vector.shape_cast %30 : vector<8x8xf32> to vector<1x8x8xf32>
    %35 = vector.shape_cast %31 : vector<8x8xf32> to vector<1x8x8xf32>
    %36 = vector.shape_cast %32 : vector<8x8xf32> to vector<1x8x8xf32>
    %37 = tpu.concatenate %33, %34, %35, %36 in 0 : vector<1x8x8xf32>, vector<1x8x8xf32>, vector<1x8x8xf32>, vector<1x8x8xf32> -> vector<4x8x8xf32>
    %38 = arith.truncf %37 : vector<4x8x8xf32> to vector<4x8x8xbf16>
    "tpu.trace_start"() <{level = 10 : i32, message = "hqd,hkd->hqk"}> : () -> ()
    %cst_5 = arith.constant dense<0.000000e+00> : vector<4x8x8xf32>
    %39 = tpu.matmul %16, %27, %cst_5 {dimension_numbers = #tpu.dot_dimension_numbers<[2], [2], [1], [1], [0, 0, 0, 1, 1, 1], [0], [0]>} : vector<4x8x8xbf16>, vector<4x8x8xbf16>, vector<4x8x8xf32> -> vector<4x8x8xf32>
    "tpu.trace_stop"() : () -> ()
    %cst_6 = arith.constant dense<0xFF800000> : vector<4x8xf32>
    %40 = vector.multi_reduction <maximumf>, %39, %cst_6 [2] : vector<4x8x8xf32> to vector<4x8xf32>
    %41 = vector.shape_cast %40 : vector<4x8xf32> to vector<4x8x1xf32>
    %42 = vector.broadcast %41 : vector<4x8x1xf32> to vector<4x8x8xf32>
    %43 = arith.subf %39, %42 : vector<4x8x8xf32>
    %44 = math.exp %43 : vector<4x8x8xf32>
    %cst_7 = arith.constant dense<0.000000e+00> : vector<4x8xf32>
    %45 = vector.multi_reduction <add>, %44, %cst_7 [2] : vector<4x8x8xf32> to vector<4x8xf32>
    %46 = vector.shape_cast %45 : vector<4x8xf32> to vector<4x8x1xf32>
    %47 = arith.truncf %44 : vector<4x8x8xf32> to vector<4x8x8xbf16>
    "tpu.trace_start"() <{level = 10 : i32, message = "hqk,hkd->hqd"}> : () -> ()
    %cst_8 = arith.constant dense<0.000000e+00> : vector<4x8x8xf32>
    %48 = tpu.matmul %47, %38, %cst_8 {dimension_numbers = #tpu.dot_dimension_numbers<[2], [1], [1], [2], [0, 0, 0, 1, 1, 2], [0], [0]>} : vector<4x8x8xbf16>, vector<4x8x8xbf16>, vector<4x8x8xf32> -> vector<4x8x8xf32>
    "tpu.trace_stop"() : () -> ()
    %49 = tpu.reciprocal %46 : vector<4x8x1xf32> -> vector<4x8x1xf32>
    %50 = vector.broadcast %49 : vector<4x8x1xf32> to vector<4x8x8xf32>
    %51 = arith.mulf %48, %50 : vector<4x8x8xf32>
    %52 = arith.truncf %51 : vector<4x8x8xf32> to vector<4x8x8xbf16>
    %c0_9 = arith.constant 0 : index
    %c0_10 = arith.constant 0 : index
    %c0_11 = arith.constant 0 : index
    %53 = vector.load %arg3[%c0_9, %c0_10, %c0_11] : memref<4x8x32xbf16, #tpu.memory_space<vmem>>, vector<4x8x32xbf16>
    "tpu.trace_start"() <{level = 10 : i32, message = "hnd,hdc->hnc"}> : () -> ()
    %cst_12 = arith.constant dense<0.000000e+00> : vector<4x8x32xf32>
    %54 = tpu.matmul %52, %53, %cst_12 {dimension_numbers = #tpu.dot_dimension_numbers<[2], [1], [1], [2], [0, 0, 0, 1, 1, 2], [0], [0]>} : vector<4x8x8xbf16>, vector<4x8x32xbf16>, vector<4x8x32xf32> -> vector<4x8x32xf32>
    "tpu.trace_stop"() : () -> ()
    %cst_13 = arith.constant dense<0.000000e+00> : vector<8x32xf32>
    %55 = vector.multi_reduction <add>, %54, %cst_13 [0] : vector<4x8x32xf32> to vector<8x32xf32>
    %c0_14 = arith.constant 0 : index
    %c0_15 = arith.constant 0 : index
    %56 = vector.load %arg4[%c0_14, %c0_15] : memref<1x32xf32, #tpu.memory_space<vmem>>, vector<1x32xf32>
    %57 = vector.broadcast %56 : vector<1x32xf32> to vector<8x32xf32>
    %58 = arith.addf %55, %57 : vector<8x32xf32>
    %c0_16 = arith.constant 0 : index
    %c0_17 = arith.constant 0 : index
    %c0_18 = arith.constant 0 : index
    %59 = vector.load %arg5[%c0_16, %c0_17, %c0_18] : memref<1x8x32xf32, #tpu.memory_space<vmem>>, vector<1x8x32xf32>
    %60 = vector.shape_cast %59 : vector<1x8x32xf32> to vector<8x32xf32>
    %61 = vector.shape_cast %58 : vector<8x32xf32> to vector<1x8x32xf32>
    tpu.vector_store %arg5[%c0_16, %c0_17, %c0_18], %61 {strides = array<i32>} : memref<1x8x32xf32, #tpu.memory_space<vmem>>, vector<1x8x32xf32>,
    return
  }
  func.func @transform_0(%arg0: i32) -> (i32, i32, i32) {
    %c0_i32 = arith.constant 0 : i32
    %c0_i32_0 = arith.constant 0 : i32
    %c0_i32_1 = arith.constant 0 : i32
    return %arg0, %c0_i32, %c0_i32_0 : i32, i32, i32
  }
  func.func @transform_1(%arg0: i32) -> (i32, i32) {
    %c0_i32 = arith.constant 0 : i32
    %c0_i32_0 = arith.constant 0 : i32
    %c0_i32_1 = arith.constant 0 : i32
    return %c0_i32, %c0_i32_0 : i32, i32
  }
  func.func @transform_2(%arg0: i32) -> (i32, i32, i32) {
    %c0_i32 = arith.constant 0 : i32
    %c0_i32_0 = arith.constant 0 : i32
    %c0_i32_1 = arith.constant 0 : i32
    %c0_i32_2 = arith.constant 0 : i32
    return %c0_i32, %c0_i32_0, %c0_i32_1 : i32, i32, i32
  }
  func.func @transform_3(%arg0: i32) -> (i32, i32) {
    %c0_i32 = arith.constant 0 : i32
    %c0_i32_0 = arith.constant 0 : i32
    %c0_i32_1 = arith.constant 0 : i32
    return %c0_i32, %c0_i32_0 : i32, i32
  }
  func.func @transform_4(%arg0: i32) -> (i32, i32, i32) {
    %c0_i32 = arith.constant 0 : i32
    %c0_i32_0 = arith.constant 0 : i32
    %c0_i32_1 = arith.constant 0 : i32
    return %arg0, %c0_i32, %c0_i32_0 : i32, i32, i32
  }
}

</mosaic_0001>

<bundles_post_ra>
// kernel: tpu_custom_call.1
= control target key start
LH: loop header
LB: loop body
LE: loop exit
PB: predicated region body
PF: predicated region fallthrough
CT: control target
= control target key end

     0   :  { %9 = vsyncpa [#allocation3], 0  ;;  %s1590_s0 = inlined_call_operand.vmem [shape: bf16[2,8,32], index: 0, kind: input, shape index: {}]   ;;  %s1591_s1 = inlined_call_operand.vmem [shape: bf16[96,32], index: 1, kind: input, shape index: {}]   ;;  %s1592_s2 = inlined_call_operand.vmem [shape: bf16[4,8,32], index: 2, kind: input, shape index: {}]   ;;  %s1593_s3 = inlined_call_operand.vmem [shape: f32[1,32], index: 3, kind: input, shape index: {}]   ;;  %s1594_s4 = inlined_call_operand.hbm [shape: f32[2,8,32], index: 4, kind: output, shape index: {}]  }
   0x1   :  { %11 = vsyncpa [#allocation3 + $0x1], 0  ;;  %s1361_s15 = smov 0   ;;  %s1363_s16 = smov 0  }
   0x2   :  { %s1365_s17 = smov 0   ;;  %s1367_s18 = smov 0  }
   0x3 LB: > { %s1382_s19 = sadd.s32 4294967295, %s1326_s18   ;;  %s1047_s20 = sadd.s32 4294967294, %s1326_s18   ;;  %s1326_s18 = sphi %s1367_s18, %s1600_s18   ;;  %s1322_s17 = sphi %s1365_s17, %s1599_s17   ;;  %s1318_s16 = sphi %s1363_s16, %s1598_s16   ;;  %s1314_s15 = sphi %s1361_s15, %s1597_s15  }
   0x4   : > { %s1386_s21 = sadd.s32 1, %s1326_s18   ;;  %s113_s22 = sadd.s32 1, %s1322_s17 }
   0x5   : > { %s110_s23 = ssub.s32 %s1326_s18, %s1386_s21  ;;  %p123_p0 = scmp.ne.s32.totalorder %s1322_s17, %s1318_s16 }
   0x6   : > { %p111_p1 = scmp.eq.s32.totalorder %s110_s23, 0  ;;  %p124_p2 = scmp.eq.s32.totalorder %s1382_s19, 1 }
   0x7   : > { %p129_p3 = scmp.ne.s32.totalorder %s1318_s16, %s1314_s15  ;;  %p130_p4 = scmp.eq.s32.totalorder %s1047_s20, 1 }
   0x8   : > { %s1397_s24 = scalar_select %p111_p1, %s1322_s17, %s113_s22  }
   0x9   : > { %p1399_p5 = por %p124_p2, %p123_p0  ;;  %p1403_p6 = por %p130_p4, %p129_p3 }
   0xa   : > { %p1050_p7 = scmp.ge.s32.totalorder %s1326_s18, 1  ;;  %p164_p8 = scmp.lt.s32.totalorder %s1326_s18, 3 }
   0xc   : > { %p165_p9 = pnand %p1050_p7, %p164_p8 }
   0xd   : > { %v1242_v0 = vld [vmem:[%s1591_s1] sm:$0xff] (!%p165_p9)   ;;  %v1328_v1 = vmov (!%p165_p9), 0.0   ;;  %vm237_vm0 = vcmask (!%p165_p9), 261120   ;;  %v1243_v3 = vld [vmem:[%s1591_s1 + $0x8] sm:$0xff] (!%p165_p9)   ;;  %vm1329_vm1 = vmmov (!%p165_p9), 0   ;;  %v1244_v5 = vld [vmem:[%s1591_s1 + $0x10] sm:$0xff] (!%p165_p9)  }
   0xe   : > { %168 = sbr.rel (%p165_p9) target bundleno = 1349 (0x545), region = 36  ;;  %1108 = vmatprep.subr.bf16.mxu0 (!%p165_p9), %v1328_v1  ;;  %1124 = vmatprep.subr.bf16.mxu1 (!%p165_p9), %v1328_v1  ;;  %v242_v2 = vsel (!%p165_p9), %vm237_vm0, %v1242_v0, 0  ;;  %v245_v4 = vsel (!%p165_p9), %vm237_vm0, %v1243_v3, 0  ;;  %v248_v6 = vsel (!%p165_p9), %vm237_vm0, %v1244_v5, 0  ;;  %v1245_v7 = vld [vmem:[%s1591_s1 + $0x18] sm:$0xff] (!%p165_p9)   ;;  %v1246_v9 = vld [vmem:[%s1591_s1 + $0x20] sm:$0xff] (!%p165_p9)  }
   0xf   : > { %1109 = vmatpush3.bf16.xpose.msra.mxu0 (!%p165_p9), %v242_v2  ;;  %1120 = vmatprep.mubr.msk.bf16.mxu0 (!%p165_p9), %vm1329_vm1, %v1328_v1  ;;  %v251_v8 = vsel (!%p165_p9), %vm237_vm0, %v1245_v7, 0  ;;  %v254_v10 = vsel (!%p165_p9), %vm237_vm0, %v1246_v9, 0  ;;  %p189_p10 = scmp.lt.s32.totalorder (!%p165_p9), %s1382_s19, 1  ;;  %v1247_v11 = vld [vmem:[%s1591_s1 + $0x28] sm:$0xff] (!%p165_p9)   ;;  %s1330_s27 = smov (!%p165_p9), 104   ;;  %vm331_vm2 = vcmask (!%p165_p9), 64512  }
  0x10   : > { %1110 = vmatprep.subr.bf16.mxu0 (!%p165_p9), %v1328_v1  ;;  %1126 = vmatprep.mubr.msk.bf16.mxu1 (!%p165_p9), %vm1329_vm1, %v1328_v1  ;;  %v257_v12 = vsel (!%p165_p9), %vm237_vm0, %v1247_v11, 0  ;;  %s1331_s28 = smov (!%p165_p9), 120   ;;  %s1332_s29 = smov (!%p165_p9), 112   ;;  %vm570_vm3 = vcmask (!%p165_p9), 1043456  }
  0x11   : > { %s1333_s30 = smov (!%p165_p9), 96   ;;  %s1334_s5 = smov (!%p165_p9), 64  }
  0x12   : > { %s1335_s8 = smov (!%p165_p9), [#allocation2]  }
  0x13   : > { %s1268_s9 = sshll.u32 (!%p165_p9), %s1335_s8, 4  ;;  %s1269_s9 = int_to_ptr.vmem [resolvable:$false] %s1268_s9 }
  0x14   : > { %s1270_s10 = scalar_lea.vmem (!%p165_p9), %s1269_s9, 256 }
  0x15   : > { %s190_s13 = scalar_select %p189_p10, %s1382_s19, 1 }
  0x17   : > { %1111 = vmatpush3.bf16.xpose.msra.mxu0 %v245_v4  ;;  %s1052_s14 = sshll.u32 %s190_s13, 2 }
  0x18   : > { %1112 = vmatprep.subr.bf16.mxu0 %v1328_v1  ;;  %s192_s23 = scalar_lea.vmem %s1590_s0, %s1052_s14  ;;  %s186_s14 = sand.u32 1, %s1318_s16  }
  0x19   : > { %v194_v13 = vld [vmem:[%s192_s23] sm:$0xf]  ;;  %s1051_s20 = sshll.u32 %s186_s14, 3  ;;  %s975_s7 = scalar_lea.sflag [#allocation3], %s186_s14 }
  0x1f   : > { %1113 = vmatpush3.bf16.xpose.msra.mxu0 %v248_v6 }
  0x20   : > { %1114 = vmatprep.subr.bf16.mxu0 %v1328_v1 }
  0x27   : > { %1115 = vmatpush3.bf16.xpose.msra.mxu0 %v251_v8 }
  0x28   : > { %1116 = vmatprep.subr.bf16.mxu0 %v1328_v1 }
  0x2f   : > { %1117 = vmatpush3.bf16.xpose.msra.mxu0 %v254_v10 }
  0x30   : > { %1118 = vmatprep.subr.bf16.mxu0 %v1328_v1 }
  0x37   : > { %1119 = vmatpush3.bf16.xpose.msra.mxu0 %v257_v12 }
  0x38   : > { %1160 = vmatprep.subr.bf16.mxu0 %v1328_v1 }
  0x3e   : > { %1121 = vmatmul.mubr.msk.bf16.vlgmr.msra.gmra.mrb[0].mxu0 %vm237_vm0, %v194_v13 }
  0x3f   : > { %1162 = vmatprep.mubr.msk.bf16.mxu0 %vm1329_vm1, %v1328_v1 }
 0x111   : > { %v293_v14 = vpop.f32.mrb[0].mxu0 }
 0x112   : > { %321 = vrot.lane.b32.xlu1 %v293_v14, %s1330_s27  ;;  %315 = vrot.lane.b32.xlu0 %v293_v14, %s1331_s28  ;;  %v1122_v15 = vpop.f32.mrb[1].mxu0  ;;  %v324_v18 = vpack.c.bf16 %v293_v14, %v293_v14  ;;  %v299_v19 = vmul.f32 0.35355338, %v293_v14 }
 0x113   : > { %v296_v16 = vpop.f32.mrb[2].mxu0 }
 0x114   : > { %v1123_v17 = vpop.f32.mrb[3].mxu0  ;;  %v310_v28 = vpack.c.bf16 %v299_v19, %v299_v19 }
 0x116   : > { %318 = vrot.lane.b32.xlu0 %v293_v14, %s1332_s29  ;;  %329 = vrot.lane.b32.xlu1 %v324_v18, %s1333_s30 }
 0x11a   : > { %301 = vrot.lane.b32.xlu1 %v299_v19, %s1331_s28  ;;  %s188_s28 = scalar_lea.vmem [#allocation2], %s1051_s20 }
 0x11e   : > { %304 = vrot.lane.b32.xlu1 %v299_v19, %s1332_s29  ;;  %s988_s29 = sshll.u32 %s188_s28, 4  ;;  %s1549_s29 = int_to_ptr.vmem [resolvable:$true] %s988_s29 }
 0x11f   : > { %p1271_p0 = scmp.lt.s32.totalorder %s1549_s29, %s1269_s9 }
 0x122   : > { %307 = vrot.lane.b32.xlu1 %v299_v19, %s1330_s27  ;;  %s1074_s27 = sshll.u32 %s1382_s19, 7  ;;  %s1264_s19 = scalar_lea.vmem %s1549_s29, 128 }
 0x123   : > { %s1547_s6 = scalar_lea.hbm %s1594_s4, %s1074_s27  ;;  %p1265_p11 = scmp.ne.s32.totalorder %s1549_s29, %s1264_s19 }
 0x124   : > { %p1272_p1 = scmp.lt.s32.totalorder %s1270_s10, %s1264_s19 }
 0x125   : > { %p1266_p12 = pnand %p1265_p11, %p1399_p5 }
 0x126   : > { %565 = vrot.lane.b32.xlu1 %v324_v18, %s1334_s5  ;;  %p1273_p2 = por %p1272_p1, %p1271_p0 }
 0x127   : > { %p1267_p13 = pneg %p1266_p12 }
 0x129   : > { %p1274_p3 = pnand %p1273_p2, %p1267_p13 }
 0x184   : > { %v322_v20 = vpop.permute.xlu1 %321  ;;  %v316_v21 = vpop.permute.xlu0 %315 }
 0x185   : > { %v1454_v22 = vpack.c.bf16 %v316_v21, %v316_v21  ;;  %v327_v27 = vpack.c.bf16 %v322_v20, %v322_v20  ;;  %v770_v21 = vld [vmem:[%s1592_s2] sm:$0xf] }
 0x187   : > { %379 = vrot.lane.b32.xlu0 %v1454_v22, %s1333_s30 }
 0x188   : > { %v319_v23 = vpop.permute.xlu0 %318  ;;  %v330_v24 = vpop.permute.xlu1 %329 }
 0x189   : > { %v326_v25 = vpack.c.bf16 %v319_v23, %v319_v23  ;;  %v336_v26 = vsel %vm331_vm2, %v330_v24, 0 }
 0x18a   : > { %1125 = vmatpush3.bf16.xpose.msra.mxu1 %v336_v26 }
 0x18b   : > { %428 = vrot.lane.b32.xlu0 %v326_v25, %s1333_s30  ;;  %1130 = vmatprep.subr.bf16.mxu1 %v1328_v1 }
 0x18c   : > { %v302_v31 = vpop.permute.xlu1 %301 }
 0x18d   : > { %v311_v33 = vpack.c.bf16 %v302_v31, %v302_v31 }
 0x18f   : > { %477 = vrot.lane.b32.xlu0 %v327_v27, %s1333_s30 }
 0x190   : > { %v305_v35 = vpop.permute.xlu1 %304 }
 0x191   : > { %1127 = vmatmul.mubr.msk.bf16.vlgmr.msra.gmra.mrb[0].mxu1 %vm331_vm2, %v310_v28  ;;  %v312_v37 = vpack.c.bf16 %v305_v35, %v305_v35 }
 0x192   : > { %1132 = vmatprep.mubr.msk.bf16.mxu1 %vm1329_vm1, %v1328_v1 }
 0x194   : > { %v308_v38 = vpop.permute.xlu1 %307 }
 0x195   : > { %v313_v41 = vpack.c.bf16 %v308_v38, %v308_v38 }
 0x198   : > { %v566_v40 = vpop.permute.xlu1 %565 }
 0x199   : > { %v572_v42 = vsel %vm570_vm3, %v566_v40, 0 }
 0x1f9   : > { %v380_v29 = vpop.permute.xlu0 %379 }
 0x1fa   : > { %v385_v30 = vsel %vm331_vm2, %v380_v29, 0 }
 0x1fb   : > { %1131 = vmatpush3.bf16.xpose.msra.mxu1 %v385_v30 }
 0x1fc   : > { %1136 = vmatprep.subr.bf16.mxu1 %v1328_v1 }
 0x1fd   : > { %v429_v32 = vpop.permute.xlu0 %428 }
 0x1fe   : > { %v434_v34 = vsel %vm331_vm2, %v429_v32, 0 }
 0x201   : > { %v478_v36 = vpop.permute.xlu0 %477 }
 0x202   : > { %1133 = vmatmul.mubr.msk.bf16.vlgmr.msra.gmra.mrb[4].mxu1 %vm331_vm2, %v311_v33  ;;  %v483_v39 = vsel %vm331_vm2, %v478_v36, 0  ;;  %v771_v33 = vld [vmem:[%s1592_s2 + $0x4] sm:$0xf] }
 0x203   : > { %1137 = vmatpush3.bf16.xpose.msra.mxu1 %v434_v34  ;;  %1138 = vmatprep.mubr.msk.bf16.mxu1 %vm1329_vm1, %v1328_v1  ;;  %v824_v34 = vsel %vm570_vm3, %v771_v33, 0 }
 0x204   : > { %1142 = vmatprep.subr.bf16.mxu1 %v1328_v1 }
 0x20a   : > { %1139 = vmatmul.mubr.msk.bf16.vlgmr.msra.gmra.mrb[8].mxu1 %vm331_vm2, %v312_v37  ;;  %v772_v37 = vld [vmem:[%s1592_s2 + $0x8] sm:$0xf] }
 0x20b   : > { %1143 = vmatpush3.bf16.xpose.msra.mxu1 %v483_v39  ;;  %1144 = vmatprep.mubr.msk.bf16.mxu1 %vm1329_vm1, %v1328_v1 }
 0x20c   : > { %1148 = vmatprep.subr.bf16.mxu1 %v1328_v1 }
 0x212   : > { %1145 = vmatmul.mubr.msk.bf16.vlgmr.msra.gmra.mrb[12].mxu1 %vm331_vm2, %v313_v41 }
 0x213   : > { %1149 = vmatpush3.bf16.msra.mxu1 %v572_v42  ;;  %1150 = vmatprep.mubr.msk.bf16.mxu1 %vm1329_vm1, %v1328_v1 }
 0x214   : > { %1154 = vmatprep.subr.bf16.mxu1 %v1328_v1 }
 0x264   : > { %v372_v43 = vpop.f32.mrb[0].mxu1 }
 0x265   : > { %v1128_v44 = vpop.f32.mrb[1].mxu1  ;;  %v525_v45 = vsel %vm331_vm2, %v372_v43, -inf }
 0x266   : > { %526 = vmax.xlane.f32.xlu0 %v525_v45  ;;  %v375_v46 = vpop.f32.mrb[2].mxu1 }
 0x267   : > { %v1129_v47 = vpop.f32.mrb[3].mxu1 }
 0x2d5   : > { %v421_v48 = vpop.f32.mrb[4].mxu1 }
 0x2d6   : > { %v1134_v49 = vpop.f32.mrb[5].mxu1  ;;  %v528_v50 = vsel %vm331_vm2, %v421_v48, -inf }
 0x2d7   : > { %529 = vmax.xlane.f32.xlu1 %v528_v50  ;;  %v424_v51 = vpop.f32.mrb[6].mxu1  ;;  %v773_v49 = vld [vmem:[%s1592_s2 + $0xc] sm:$0xf] }
 0x2d8   : > { %v1135_v52 = vpop.f32.mrb[7].mxu1 }
 0x2dd   : > { %v470_v53 = vpop.f32.mrb[8].mxu1 }
 0x2de   : > { %v1140_v54 = vpop.f32.mrb[9].mxu1  ;;  %v531_v55 = vsel %vm331_vm2, %v470_v53, -inf }
 0x2df   : > { %532 = vmax.xlane.f32.xlu0 %v531_v55  ;;  %v473_v56 = vpop.f32.mrb[10].mxu1 }
 0x2e0   : > { %v1141_v57 = vpop.f32.mrb[11].mxu1 }
 0x2e5   : > { %v519_v58 = vpop.f32.mrb[12].mxu1 }
 0x2e6   : > { %v1146_v59 = vpop.f32.mrb[13].mxu1  ;;  %v534_v60 = vsel %vm331_vm2, %v519_v58, -inf }
 0x2e7   : > { %535 = vmax.xlane.f32.xlu0 %v534_v60  ;;  %v522_v61 = vpop.f32.mrb[14].mxu1  ;;  %v916_v60 = vsel %vm570_vm3, %v773_v49, 0 }
 0x2e8   : > { %662 = vrot.lane.b32.xlu1 %v326_v25, %s1334_s5  ;;  %v1147_v62 = vpop.f32.mrb[15].mxu1 }
 0x2ec   : > { %710 = vrot.lane.b32.xlu1 %v327_v27, %s1334_s5  ;;  %v778_v27 = vsel %vm570_vm3, %v770_v21, 0 }
 0x2f3   : > { %v527_v63 = vpop.xlane.xlu0 %526 }
 0x2f4   : > { %v537_v0 = vsub.f32 %v372_v43, %v527_v63  ;;  %v870_v43 = vsel %vm570_vm3, %v772_v37, 0 }
 0x2f6   : > { %v541_v2 = vmul.f32 1.442695, %v537_v0 }
 0x2f8   : > { %1248 = vpow2.f32 %v541_v2 }
 0x2fd   : > { %614 = vrot.lane.b32.xlu0 %v1454_v22, %s1334_s5 }
 0x302   : > { %v1249_v3 = vpop.eup %1248 }
 0x303   : > { %v561_v4 = vpack.c.bf16 %v1249_v3, %v1249_v3  ;;  %v549_v5 = vsel %vm331_vm2, %v1249_v3, 0.0 }
 0x305   : > { %1151 = vmatmul.mubr.msk.bf16.vlgmr.msra.gmra.mrb[16].mxu1 %vm331_vm2, %v561_v4 }
 0x306   : > { %1156 = vmatprep.mubr.msk.bf16.mxu1 %vm1329_vm1, %v1328_v1 }
 0x31c   : > { %550 = vadd.xlane.f32.xlu0 %v549_v5 }
 0x364   : > { %v530_v6 = vpop.xlane.xlu1 %529 }
 0x365   : > { %v538_v7 = vsub.f32 %v421_v48, %v530_v6 }
 0x367   : > { %v543_v8 = vmul.f32 1.442695, %v538_v7 }
 0x368   : > { %v663_v9 = vpop.permute.xlu1 %662 }
 0x369   : > { %1250 = vpow2.f32 %v543_v8  ;;  %v668_v10 = vsel %vm570_vm3, %v663_v9, 0 }
 0x36a   : > { %1161 = vmatpush3.bf16.msra.mxu0 %v668_v10 }
 0x36b   : > { %1172 = vmatprep.subr.bf16.mxu0 %v1328_v1 }
 0x36c   : > { %v533_v11 = vpop.xlane.xlu0 %532  ;;  %v711_v22 = vpop.permute.xlu1 %710 }
 0x36d   : > { %v539_v12 = vsub.f32 %v470_v53, %v533_v11  ;;  %v716_v28 = vsel %vm570_vm3, %v711_v22, 0 }
 0x36f   : > { %v545_v13 = vmul.f32 1.442695, %v539_v12 }
 0x371   : > { %1252 = vpow2.f32 %v545_v13 }
 0x373   : > { %v1251_v14 = vpop.eup %1250 }
 0x374   : > { %v536_v15 = vpop.xlane.xlu0 %535  ;;  %v552_v16 = vsel %vm331_vm2, %v1251_v14, 0.0  ;;  %v562_v24 = vpack.c.bf16 %v1251_v14, %v1251_v14 }
 0x375   : > { %v540_v17 = vsub.f32 %v519_v58, %v536_v15  ;;  %553 = vadd.xlane.f32.xlu1 %v552_v16 }
 0x377   : > { %v547_v18 = vmul.f32 1.442695, %v540_v17 }
 0x378   : > { %v615_v19 = vpop.permute.xlu0 %614 }
 0x379   : > { %1254 = vpow2.f32 %v547_v18  ;;  %v620_v20 = vsel %vm570_vm3, %v615_v19, 0 }
 0x37a   : > { %1155 = vmatpush3.bf16.msra.mxu1 %v620_v20 }
 0x37b   : > { %v1253_v23 = vpop.eup %1252  ;;  %1166 = vmatprep.subr.bf16.mxu1 %v1328_v1 }
 0x37c   : > { %v555_v25 = vsel %vm331_vm2, %v1253_v23, 0.0  ;;  %v563_v26 = vpack.c.bf16 %v1253_v23, %v1253_v23 }
 0x37d   : > { %556 = vadd.xlane.f32.xlu0 %v555_v25  ;;  %1157 = vmatmul.mubr.msk.bf16.vlgmr.msra.gmra.mrb[20].mxu1 %vm331_vm2, %v562_v24  ;;  %v1072_v25 = vld [vmem:[%s1593_s3] ss:$0 sm:$0xff] }
 0x37e   : > { %1163 = vmatmul.mubr.msk.bf16.vlgmr.msra.gmra.mrb[4].mxu0 %vm331_vm2, %v563_v26  ;;  %1167 = vmatpush3.bf16.msra.mxu1 %v716_v28 }
 0x37f   : > { %1168 = vmatprep.mubr.msk.bf16.mxu1 %vm1329_vm1, %v1328_v1  ;;  %1173 = vmatpush3.bf16.msra.mxu0 %v778_v27 }
 0x380   : > { %1174 = vmatprep.mubr.msk.bf16.mxu0 %vm1329_vm1, %v1328_v1  ;;  %1178 = vmatprep.subr.bf16.mxu1 %v1328_v1 }
 0x381   : > { %1184 = vmatprep.subr.bf16.mxu0 %v1328_v1 }
 0x383   : > { %v1255_v29 = vpop.eup %1254 }
 0x384   : > { %v558_v30 = vsel %vm331_vm2, %v1255_v29, 0.0  ;;  %v564_v31 = vpack.c.bf16 %v1255_v29, %v1255_v29 }
 0x385   : > { %559 = vadd.xlane.f32.xlu0 %v558_v30 }
 0x386   : > { %1169 = vmatmul.mubr.msk.bf16.vlgmr.msra.gmra.mrb[24].mxu1 %vm331_vm2, %v564_v31 }
 0x387   : > { %1180 = vmatprep.mubr.msk.bf16.mxu1 %vm1329_vm1, %v1328_v1  ;;  %1179 = vmatpush3.bf16.msra.mxu1 %v824_v34 }
 0x388   : > { %1190 = vmatprep.subr.bf16.mxu1 %v1328_v1 }
 0x3a9   : > { %v551_v32 = vpop.xlane.xlu0 %550 }
 0x3aa   : > { %1256 = vrcp.f32 %v551_v32 }
 0x3b4   : > { %v1257_v35 = vpop.eup %1256 }
 0x3d8   : > { %v608_v36 = vpop.f32.mrb[16].mxu1 }
 0x3d9   : > { %v762_v38 = vmul.f32 %v1257_v35, %v608_v36  ;;  %v1152_v39 = vpop.f32.mrb[17].mxu1 }
 0x3da   : > { %v611_v40 = vpop.f32.mrb[18].mxu1 }
 0x3db   : > { %v766_v41 = vpack.c.bf16 %v762_v38, %v762_v38  ;;  %v1153_v42 = vpop.f32.mrb[19].mxu1 }
 0x3dd   : > { %1175 = vmatmul.mubr.msk.bf16.vlgmr.msra.gmra.mrb[8].mxu0 %vm331_vm2, %v766_v41 }
 0x3de   : > { %1185 = vmatpush3.bf16.msra.mxu0 %v870_v43  ;;  %1186 = vmatprep.mubr.msk.bf16.mxu0 %vm1329_vm1, %v1328_v1 }
 0x402   : > { %v554_v44 = vpop.xlane.xlu1 %553 }
 0x403   : > { %1258 = vrcp.f32 %v554_v44 }
 0x40a   : > { %v557_v45 = vpop.xlane.xlu0 %556 }
 0x40b   : > { %1260 = vrcp.f32 %v557_v45 }
 0x40d   : > { %v1259_v47 = vpop.eup %1258 }
 0x412   : > { %v560_v46 = vpop.xlane.xlu0 %559 }
 0x413   : > { %1262 = vrcp.f32 %v560_v46 }
 0x415   : > { %v1261_v50 = vpop.eup %1260 }
 0x41d   : > { %v1263_v63 = vpop.eup %1262 }
 0x450   : > { %v656_v48 = vpop.f32.mrb[20].mxu1 }
 0x451   : > { %v763_v51 = vmul.f32 %v1259_v47, %v656_v48  ;;  %v1158_v52 = vpop.f32.mrb[21].mxu1  ;;  %v704_v53 = vpop.f32.mrb[4].mxu0 }
 0x452   : > { %v764_v54 = vmul.f32 %v1261_v50, %v704_v53  ;;  %v659_v55 = vpop.f32.mrb[22].mxu1  ;;  %v1164_v56 = vpop.f32.mrb[5].mxu0 }
 0x453   : > { %v767_v57 = vpack.c.bf16 %v763_v51, %v763_v51  ;;  %v1159_v58 = vpop.f32.mrb[23].mxu1  ;;  %v707_v59 = vpop.f32.mrb[6].mxu0 }
 0x454   : > { %v768_v61 = vpack.c.bf16 %v764_v54, %v764_v54  ;;  %v1165_v62 = vpop.f32.mrb[7].mxu0 }
 0x455   : > { %1181 = vmatmul.mubr.msk.bf16.vlgmr.msra.gmra.mrb[28].mxu1 %vm331_vm2, %v767_v57 }
 0x456   : > { %1187 = vmatmul.mubr.msk.bf16.vlgmr.msra.gmra.mrb[12].mxu0 %vm331_vm2, %v768_v61  ;;  %1191 = vmatpush3.bf16.msra.mxu1 %v916_v60 }
 0x457   : > { %1192 = vmatprep.mubr.msk.bf16.mxu1 %vm1329_vm1, %v1328_v1 }
 0x459   : > { %v752_v0 = vpop.f32.mrb[24].mxu1 }
 0x45a   : > { %v765_v2 = vmul.f32 %v1263_v63, %v752_v0  ;;  %v1170_v3 = vpop.f32.mrb[25].mxu1 }
 0x45b   : > { %v755_v4 = vpop.f32.mrb[26].mxu1 }
 0x45c   : > { %v769_v5 = vpack.c.bf16 %v765_v2, %v765_v2  ;;  %v1171_v6 = vpop.f32.mrb[27].mxu1 }
 0x45e   : > { %1193 = vmatmul.mubr.msk.bf16.vlgmr.msra.gmra.mrb[32].mxu1 %vm331_vm2, %v769_v5 }
 0x4b0   : > { %v814_v7 = vpop.f32.mrb[8].mxu0 }
 0x4b1   : > { %v1176_v8 = vpop.f32.mrb[9].mxu0  ;;  %v958_v12 = vsel %vm237_vm0, %v814_v7, 0.0 }
 0x4b2   : > { %v817_v9 = vpop.f32.mrb[10].mxu0 }
 0x4b3   : > { %v1177_v10 = vpop.f32.mrb[11].mxu0 }
 0x528   : > { %v860_v11 = vpop.f32.mrb[28].mxu1 }
 0x529   : > { %v959_v13 = vsel %vm237_vm0, %v860_v11, 0.0  ;;  %v1182_v1 = vpop.f32.mrb[29].mxu1  ;;  %v906_v14 = vpop.f32.mrb[12].mxu0 }
 0x52a   : > { %v960_v15 = vadd.f32 %v959_v13, %v958_v12  ;;  %v961_v16 = vsel %vm237_vm0, %v906_v14, 0.0  ;;  %v863_v17 = vpop.f32.mrb[30].mxu1  ;;  %v1188_v18 = vpop.f32.mrb[13].mxu0 }
 0x52b   : > { %v1183_v19 = vpop.f32.mrb[31].mxu1  ;;  %v909_v20 = vpop.f32.mrb[14].mxu0 }
 0x52c   : > { %v962_v21 = vadd.f32 %v961_v16, %v960_v15  ;;  %v1189_v22 = vpop.f32.mrb[15].mxu0 }
 0x531   : > { %v952_v23 = vpop.f32.mrb[32].mxu1 }
 0x532   : > { %v963_v24 = vsel %vm237_vm0, %v952_v23, 0.0  ;;  %v1194_v26 = vpop.f32.mrb[33].mxu1 }
 0x533   : > { %v964_v27 = vadd.f32 %v963_v24, %v962_v21  ;;  %v955_v28 = vpop.f32.mrb[34].mxu1 }
 0x534   : > { %v1195_v29 = vpop.f32.mrb[35].mxu1 }
 0x535   : > { %v972_v30 = vadd.f32 %v1072_v25, %v964_v27 }
 0x537   : > { %973 = vst.msk [vmem:[%s188_s28] sm:$0xff] %vm237_vm0, %v972_v30 }
 0x538   : > { %1277 = shalt.err (!%p1274_p3)
}
 0x539   : > { %s1278_s11 = scalar_lea.hbm %s1547_s6, 128  ;;  %s1282_s14 = scalar_lea.hbm %s1594_s4, 256 }
 0x53a   : > { %p1279_p4 = scmp.ne.s32.totalorder %s1547_s6, %s1278_s11  ;;  %p1283_p9 = scmp.lt.u32.totalorder %s1547_s6, %s1594_s4 }
 0x53b   : > { %p1284_p10 = scmp.lt.u32.totalorder %s1282_s14, %s1278_s11  ;;  %p1286_p12 = scmp.lt.u32.totalorder %s1278_s11, %s1547_s6 }
 0x53c   : > { %p1280_p7 = pnand %p1279_p4, %p1399_p5 }
 0x53d   : > { %p1285_p11 = por %p1284_p10, %p1283_p9 }
 0x53e   : > { %p1281_p8 = pneg %p1280_p7 }
 0x53f   : > { %p1287_p13 = por %p1286_p12, %p1285_p11 }
 0x541   : > { %p1288_p0 = pnand %p1287_p13, %p1281_p8 }
 0x543   : > { %1291 = shalt.err (!%p1288_p0)
}
 0x544   : > { %1196 = dma.vmem_to_hbm [thread:$0]  (%p1399_p5), %s1549_s29, 128, %s1547_s6, %s975_s7  }
 0x545 PF: > { %p1202_p1 = scmp.ge.s32.totalorder %s1326_s18, 2  ;;  %s1000_s23 = sand.u32 1, %s1314_s15  }
 0x546   : > { %s1001_s27 = scalar_lea.sflag [#allocation3], %s1000_s23 }
 0x547   : > { %p1199_p2 = pnand %p1202_p1, %p1403_p6 }
 0x549   : > { %1309 = dma.done.wait (!%p1199_p2), %s1001_s27, 128  }
 0x54a   : > { %1311 = vsyncadd (!%p1199_p2), %s1001_s27, 4294967168  ;;  %p14_p3 = scmp.ge.s32.totalorder %s1386_s21, 4   ;;  %s1597_s15 = smov %s1318_s16 }
 0x54b   : > { %s1598_s16 = smov %s1322_s17  ;;  %s1599_s17 = smov %s1397_s24 }
 0x54c   : > { %s1600_s18 = smov %s1386_s21  ;;  %16 = sbr.rel (!%p14_p3) target bundleno = 3 (0x3), region = 71 }
 0x553   :  { %1006 = vsyncpa [#allocation3], 1 }
 0x554   :  { %1008 = vsyncpa [#allocation3 + $0x1], 1 }

</bundles_post_ra>
